<compile_context>
chip_gen: v7x
topology: tpu7x:2x2x1
jax: 0.10.0
libtpu: 0.0.40
codegen_flags: <defaults>
</compile_context>

<pallas_src>
from functools import partial

import jax
import jax.numpy as jnp
from jax.experimental import pallas as pl
from jax.experimental.pallas import tpu as pltpu


_VMEM_TILE_BUDGET = 16 * 1024 * 1024   # target for double-buffered tiles
_VMEM_LIMIT_BYTES = 32 * 1024 * 1024   # scoped VMEM limit (safe on v5e/v6e/v7x)


def _downpool_kernel(x_ref, w_ref, b_ref, o_ref):
    # x_ref: (1, Cin, TILE_L)   w_ref: (Cout, Cin)   b_ref: (Cout, 1)
    # o_ref: (1, Cout, TILE_L)
    y = jnp.dot(w_ref[...], x_ref[0],
                preferred_element_type=jnp.float32)          # f32 MXU accumulation
    # Bias add + final cast stay in f32 (cheap elementwise VPU epilogue).
    # Padded lanes of a trailing partial block carry garbage, but the store is
    # masked by Pallas and no cross-lane reduction ever reads them.
    o_ref[0] = (y + b_ref[...]).astype(o_ref.dtype)


def _pick_tile_l(L, cin, cout, in_bytes, out_bytes):
    """Fixed lane-dense L tile (1024 is in the measured 512-1024 sweet spot),
    halved only if double-buffered input/output tiles would blow the VMEM
    budget, and rounded down to a single lane-dense block for tiny L."""
    tile = 1024

    def vmem_est(t):
        return (2 * cin * t * in_bytes                 # double-buffered x tile
                + 2 * cout * t * out_bytes             # double-buffered out tile
                + 2 * (cout * cin + cout) * in_bytes)  # weight + bias buffers

    while tile > 128 and vmem_est(tile) > _VMEM_TILE_BUDGET:
        tile //= 2
    if L <= tile:
        tile = max(128, pl.cdiv(L, 128) * 128)         # lane-dense single block
    return tile


@partial(jax.jit, static_argnames=("pool", "compute_dtype"))
def downpool_forward(x, weight, bias, *, pool, compute_dtype=jnp.bfloat16):
    """DownPool forward.

    x:      (B, d_input, L_total)          (NCL, PyTorch layout)
    weight: (d_output, d_input*pool)       (1x1 conv weight, kernel dim squeezed)
    bias:   (d_output,)
    pool:   down-sampling factor s
    compute_dtype: dtype fed to the MXU (None -> keep x.dtype). bf16 default on
        every generation: the kernel is bandwidth-bound, accumulation is f32.
    Returns (B, d_output, L_total // pool), same dtype as x, NCL layout.
    """
    B, H, LT = x.shape
    assert LT % pool == 0, (LT, pool)
    L = LT // pool
    Cin = H * pool
    Cout = weight.shape[0]
    out_dtype = x.dtype

    # Cast BEFORE the rearrange so the (jit-fused) convert+transpose pass moves
    # compute_dtype bytes, not f32 bytes.
    if compute_dtype is not None and x.dtype != compute_dtype:
        x = x.astype(compute_dtype)
        weight = weight.astype(compute_dtype)

    # rearrange '... h (l s) -> ... (h s) l' as ONE composite transpose pass:
    # (B,H,L,pool) is a free reshape; swapping the last two dims gives channel
    # index h*pool + s, i.e. the NCL input the kernel wants.
    x_ncl = x.reshape(B, H, L, pool).transpose(0, 1, 3, 2).reshape(B, Cin, L)
    b2 = bias.reshape(Cout, 1).astype(jnp.float32)

    tile_l = _pick_tile_l(L, Cin, Cout,
                          in_bytes=x_ncl.dtype.itemsize,
                          out_bytes=out_dtype.itemsize)
    grid = (B, pl.cdiv(L, tile_l))

    out = pl.pallas_call(
        _downpool_kernel,
        out_shape=jax.ShapeDtypeStruct((B, Cout, L), out_dtype),
        grid=grid,
        in_specs=[
            # Activation tile: lane axis = TILE_L (multiple of 128; trailing
            # partial block is masked automatically by Pallas).
            pl.BlockSpec((1, Cin, tile_l), lambda b, lt: (b, 0, lt)),
            # Weight / bias: constant block index -> fetched once, VMEM-resident.
            pl.BlockSpec((Cout, Cin), lambda b, lt: (0, 0)),
            pl.BlockSpec((Cout, 1), lambda b, lt: (0, 0)),
        ],
        # Output written directly in NCL, lane-dense along TILE_L.
        out_specs=pl.BlockSpec((1, Cout, tile_l), lambda b, lt: (b, 0, lt)),
        compiler_params=pltpu.CompilerParams(
            dimension_semantics=("parallel", "parallel"),
            vmem_limit_bytes=_VMEM_LIMIT_BYTES),
    )(x_ncl, weight, b2)

    return out  # already (B, Cout, L) NCL — no wrapper transpose on the way out


def _reference(x, weight, bias, pool):
    B, H, LT = x.shape
    L = LT // pool
    xr = x.reshape(B, H, L, pool).transpose(0, 1, 3, 2).reshape(B, H * pool, L)
    # 1x1 conv: out[b, o, l] = sum_c W[o, c] * xr[b, c, l] + bias[o]
    return jnp.einsum('oc,bcl->bol', weight, xr) + bias[None, :, None]


if __name__ == "__main__":
    # Small shapes consistent with the module (DownPool(d_input, d_output, pool)).
    B = 2          # batch
    d_input = 4    # h
    pool = 4       # s
    L_total = 16   # (l s)
    d_output = 8

    Cin = d_input * pool

    key = jax.random.PRNGKey(0)
    kx, kw, kb = jax.random.split(key, 3)

    x = jax.random.normal(kx, (B, d_input, L_total), dtype=jnp.float32)

    # Deterministic parameter init (effective weight-normed 1x1 conv weight):
    # kaiming-normal-like std = sqrt(2 / fan_in), fan_in = Cin * kernel_size(=1).
    w_std = (2.0 / Cin) ** 0.5
    weight = w_std * jax.random.normal(kw, (d_output, Cin), dtype=jnp.float32)
    # Conv1d default bias init: U(-1/sqrt(fan_in), 1/sqrt(fan_in))
    b_bound = 1.0 / (Cin ** 0.5)
    bias = jax.random.uniform(kb, (d_output,), dtype=jnp.float32,
                              minval=-b_bound, maxval=b_bound)

    ref = _reference(x, weight, bias, pool)

    # Exact-f32 path (matches the PyTorch module up to MXU f32 accumulation).
    out_f32 = downpool_forward(x, weight, bias, pool=pool, compute_dtype=None)
    out_f32 = jax.block_until_ready(out_f32)
    assert out_f32.shape == (B, d_output, L_total // pool), out_f32.shape
    assert jnp.allclose(out_f32, ref, atol=1e-5, rtol=1e-5), "f32 mismatch vs reference"

    # Default path: bf16 operands (half the HBM traffic), f32 accumulation.
    out_bf16 = downpool_forward(x, weight, bias, pool=pool)
    out_bf16 = jax.block_until_ready(out_bf16)
    assert out_bf16.shape == (B, d_output, L_total // pool), out_bf16.shape
    assert jnp.allclose(out_bf16, ref, atol=2e-1, rtol=5e-2), "bf16 mismatch vs reference"

    print("KERNEL_OK")
</pallas_src>

<mosaic_0001>
module attributes {stable_mosaic.version = 11 : i64} {
  func.func @_downpool_kernel(%arg0: i32, %arg1: i32, %arg2: memref<1x16x128xf32, #tpu.memory_space<vmem>>, %arg3: memref<8x16xf32, #tpu.memory_space<vmem>>, %arg4: memref<8x1xf32, #tpu.memory_space<vmem>>, %arg5: memref<1x8x128xf32, #tpu.memory_space<vmem>>) attributes {dimension_semantics = [#tpu.dimension_semantics<parallel>, #tpu.dimension_semantics<parallel>], iteration_bounds = array<i64: 2, 1>, scalar_prefetch = 0 : i64, scratch_operands = 0 : i64, tpu.core_type = #tpu.core_type<tc>, window_params = [{transform_indices = @transform_0, window_bounds = array<i64: 1, 16, 128>}, {pipeline_mode = #tpu.pipeline_mode<synchronous>, transform_indices = @transform_1, window_bounds = array<i64: 8, 16>}, {pipeline_mode = #tpu.pipeline_mode<synchronous>, transform_indices = @transform_2, window_bounds = array<i64: 8, 1>}, {transform_indices = @transform_3, window_bounds = array<i64: 1, 8, 128>}]} {
    %c0 = arith.constant 0 : index
    %c0_0 = arith.constant 0 : index
    %0 = vector.load %arg3[%c0, %c0_0] : memref<8x16xf32, #tpu.memory_space<vmem>>, vector<8x16xf32>
    %c0_1 = arith.constant 0 : index
    %c0_2 = arith.constant 0 : index
    %c0_3 = arith.constant 0 : index
    %1 = vector.load %arg2[%c0_1, %c0_2, %c0_3] : memref<1x16x128xf32, #tpu.memory_space<vmem>>, vector<1x16x128xf32>
    %2 = vector.shape_cast %1 : vector<1x16x128xf32> to vector<16x128xf32>
    %cst = arith.constant dense<0.000000e+00> : vector<8x128xf32>
    %3 = tpu.matmul %0, %2, %cst {dimension_numbers = #tpu.dot_dimension_numbers<[1], [0], [0], [1], [0, 0, 1, 1], [], []>} : vector<8x16xf32>, vector<16x128xf32>, vector<8x128xf32> -> vector<8x128xf32>
    %c0_4 = arith.constant 0 : index
    %c0_5 = arith.constant 0 : index
    %4 = vector.load %arg4[%c0_4, %c0_5] : memref<8x1xf32, #tpu.memory_space<vmem>>, vector<8x1xf32>
    %5 = vector.broadcast %4 : vector<8x1xf32> to vector<8x128xf32>
    %6 = arith.addf %3, %5 : vector<8x128xf32>
    %c0_6 = arith.constant 0 : index
    %c0_7 = arith.constant 0 : index
    %c0_8 = arith.constant 0 : index
    %7 = vector.load %arg5[%c0_6, %c0_7, %c0_8] : memref<1x8x128xf32, #tpu.memory_space<vmem>>, vector<1x8x128xf32>
    %8 = vector.shape_cast %7 : vector<1x8x128xf32> to vector<8x128xf32>
    %9 = vector.shape_cast %6 : vector<8x128xf32> to vector<1x8x128xf32>
    tpu.vector_store %arg5[%c0_6, %c0_7, %c0_8], %9 {strides = array<i32>} : memref<1x8x128xf32, #tpu.memory_space<vmem>>, vector<1x8x128xf32>,
    return
  }
  func.func @transform_0(%arg0: i32, %arg1: i32) -> (i32, i32, i32) {
    %c0_i32 = arith.constant 0 : i32
    %c0_i32_0 = arith.constant 0 : i32
    return %arg0, %c0_i32, %arg1 : i32, i32, i32
  }
  func.func @transform_1(%arg0: i32, %arg1: i32) -> (i32, i32) {
    %c0_i32 = arith.constant 0 : i32
    %c0_i32_0 = arith.constant 0 : i32
    %c0_i32_1 = arith.constant 0 : i32
    return %c0_i32, %c0_i32_0 : i32, i32
  }
  func.func @transform_2(%arg0: i32, %arg1: i32) -> (i32, i32) {
    %c0_i32 = arith.constant 0 : i32
    %c0_i32_0 = arith.constant 0 : i32
    %c0_i32_1 = arith.constant 0 : i32
    return %c0_i32, %c0_i32_0 : i32, i32
  }
  func.func @transform_3(%arg0: i32, %arg1: i32) -> (i32, i32, i32) {
    %c0_i32 = arith.constant 0 : i32
    %c0_i32_0 = arith.constant 0 : i32
    return %arg0, %c0_i32, %arg1 : i32, i32, i32
  }
}

</mosaic_0001>

<bundles_post_ra>
// kernel: downpool_forward.1
= control target key start
LH: loop header
LB: loop body
LE: loop exit
PB: predicated region body
PF: predicated region fallthrough
CT: control target
= control target key end

     0   :  { %s463_s12 = smov 0   ;;  %s465_s13 = smov 0   ;;  %s502_s0 = inlined_call_operand.vmem [shape: f32[2,16,4], index: 0, kind: input, shape index: {}]   ;;  %s503_s1 = inlined_call_operand.vmem [shape: f32[8,16], index: 1, kind: input, shape index: {}]   ;;  %s504_s2 = inlined_call_operand.vmem [shape: f32[8,1], index: 2, kind: input, shape index: {}]   ;;  %s505_s3 = inlined_call_operand.vmem [shape: f32[2,8,4], index: 3, kind: output, shape index: {}]  }
   0x1   :  { %s467_s14 = smov 0  }
   0x2 LB: > { %s25_s15 = sadd.s32 1, %s433_s13  ;;  %p365_p0 = scmp.ge.s32.totalorder %s437_s14, 1  ;;  %s437_s14 = sphi %s467_s14, %s13_s14   ;;  %s433_s13 = sphi %s465_s13, %s507_s13   ;;  %s429_s12 = sphi %s463_s12, %s506_s12  }
   0x3   : > { %p27_p1 = scmp.ge.s32.totalorder %s25_s15, 2  ;;  %p156_p2 = scmp.lt.s32.totalorder %s437_s14, 3 }
   0x5   : > { %s509_s15 = smov (%p27_p1, %s25_s15), 0  ;;  %p157_p3 = pnand %p365_p0, %p156_p2 }
   0x6   : > { %p185_p4 = scmp.lt.s32.totalorder (!%p157_p3), %s429_s12, 1  ;;  %v439_v0 = vmov (!%p157_p3), 0.0|0.0   ;;  %vm440_vm0 = vmmov (!%p157_p3), 0   ;;  %v441_v1 = vmov (!%p157_p3), 0.0   ;;  %v203_v2 = vld [vmem:[%s504_s2] sm:$0xff] (!%p157_p3)  ;;  %v442_v3 = vmov (!%p157_p3), 0  }
   0x7   : > { %160 = sbr.rel (%p157_p3) target bundleno = 238 (0xee), region = 32  ;;  %383 = vmatprep.subr.bf16.mxu0 (!%p157_p3), %v439_v0  ;;  %380 = vmatprep.mubr.msk.f32.mxu0 (!%p157_p3), %vm440_vm0, %v441_v1  ;;  %v200_v7 = vld [vmem:[%s503_s1] sm:$0xff] (!%p157_p3)  ;;  %vm209_vm1 = vcmask (!%p157_p3), 130048  }
   0x8   : > { %414 = vset.pattern.permute.xlu0 (!%p157_p3), %v442_v3 }
   0x9   : > { %206 = vperm.xlu0 (!%p157_p3), %414, %v203_v2  }
   0xe   : > { %s511_s12 = smov (!%p185_p4, %s429_s12), 1 }
   0xf   : > { %s372_s18 = sshll.u32 %s511_s12, 4  ;;  %s368_s24 = sshll.u32 %s511_s12, 3 }
  0x10   : > { %s192_s21 = scalar_lea.vmem %s502_s0, %s372_s18  ;;  %s199_s27 = scalar_lea.vmem %s505_s3, %s368_s24 }
  0x11   : > { %v201_v4 = vld [vmem:[%s192_s21] sm:$0xff]  ;;  %v202_v5 = vld [vmem:[%s192_s21 + $0x8] sm:$0xff] }
  0x12   : > { %v384_v6 = vpack.c.bf16 %v202_v5, %v201_v4 }
  0x14   : > { %385 = vmatpush3.bf16.msra.mxu0 %v384_v6 }
  0x17   : > { %381 = vmatmul.mubr.msk.f32.vlgmr.msra.gmra.mrb[0].mxu0 %vm209_vm1, %v200_v7 }
  0x88   : > { %v207_v8 = vpop.permute.xlu0 %206 }
  0xea   : > { %v279_v9 = vpop.f32.mrb[0].mxu0 }
  0xeb   : > { %v280_v10 = vadd.f32 %v279_v9, %v207_v8  ;;  %v382_v11 = vpop.f32.mrb[1].mxu0 }
  0xed   : > { %283 = vst [vmem:[%s199_s27] sm:$0xff] %v280_v10 }
  0xee PF: > { %s13_s14 = sadd.s32 1, %s437_s14   ;;  %s506_s12 = smov %s433_s13 }
  0xef   : > { %p10_p5 = scmp.ge.s32.totalorder %s13_s14, 4   ;;  %s507_s13 = smov %s509_s15 }
  0xf1   :  { %12 = sbr.rel (!%p10_p5) target bundleno = 2 (0x2), region = 62 }

</bundles_post_ra>
